<compile_context>
chip_gen: v7x
topology: tpu7x:2x2x1
jax: 0.10.0
libtpu: 0.0.40
codegen_flags: <defaults>
</compile_context>

<pallas_src>
import functools

import jax
import jax.numpy as jnp
from jax.experimental import pallas as pl
from jax.experimental.pallas import tpu as pltpu

LANE = 128
NEG_SLOPE = 0.2


def _round_up(x, m):
    return ((x + m - 1) // m) * m


def _pad2(a, rows, cols):
    return jnp.pad(a, ((0, rows - a.shape[0]), (0, cols - a.shape[1])))


def _pad3(a, rows, cols):
    return jnp.pad(a, ((0, 0), (0, rows - a.shape[1]), (0, cols - a.shape[2])))


# ----------------------------------------------------------------------------
# Kernel 1: per-etype projections (hoisted out of the dst-tile loop)
#   feat[e]  = x @ W_e^T                       (Ns_p, HD_p)
#   el_t[e]  = (x @ wl_e)^T                    (Hp, Ns_p)   -- pre-transposed
#   er[e]    =  x @ wr_e                       (Ns_p, Hp)
# wl/wr are the attention vectors folded into the projection; they are packed
# side by side into one (Fin_p, 2*Hp) operand so there is a single small matmul.
# ----------------------------------------------------------------------------
def rgat_proj_kernel(x_ref, wt_ref, wlr_ref, feat_ref, el_t_ref, er_ref, *, hp):
    x = x_ref[...]                                                    # (tile_ns, Fin_p)
    feat_ref[...] = jnp.dot(x, wt_ref[...],
                            preferred_element_type=jnp.float32)      # (tile_ns, HD_p)
    att = jnp.dot(x, wlr_ref[...],
                  preferred_element_type=jnp.float32)                # (tile_ns, 2*Hp)
    el_t_ref[...] = jnp.transpose(att[:, :hp])                       # (Hp, tile_ns)
    er_ref[...] = att[:, hp:]                                        # (tile_ns, Hp)


def rgat_projection(x_pad, wt_p, wlr_p, *, hp, tile_ns):
    n_etypes, fin_p, hd_p = wt_p.shape
    ns_p = x_pad.shape[0]
    out_shapes = (
        jax.ShapeDtypeStruct((n_etypes, ns_p, hd_p), jnp.float32),   # feat_src
        jax.ShapeDtypeStruct((n_etypes, hp, ns_p), jnp.float32),     # el^T
        jax.ShapeDtypeStruct((n_etypes, ns_p, hp), jnp.float32),     # er
    )
    return pl.pallas_call(
        functools.partial(rgat_proj_kernel, hp=hp),
        out_shape=out_shapes,
        grid_spec=pltpu.PrefetchScalarGridSpec(
            num_scalar_prefetch=0,
            grid=(n_etypes, ns_p // tile_ns),
            in_specs=[
                pl.BlockSpec((tile_ns, fin_p), lambda e, i: (i, 0)),
                pl.BlockSpec((None, fin_p, hd_p), lambda e, i: (e, 0, 0)),
                pl.BlockSpec((None, fin_p, 2 * hp), lambda e, i: (e, 0, 0)),
            ],
            out_specs=[
                pl.BlockSpec((None, tile_ns, hd_p), lambda e, i: (e, i, 0)),
                pl.BlockSpec((None, hp, tile_ns), lambda e, i: (e, 0, i)),
                pl.BlockSpec((None, tile_ns, hp), lambda e, i: (e, i, 0)),
            ],
        ),
        compiler_params=pltpu.CompilerParams(
            dimension_semantics=("arbitrary", "parallel")),
    )(x_pad, wt_p, wlr_p)


# ----------------------------------------------------------------------------
# Kernel 2: attention + aggregation, summed over edge types (+ fused epilogue)
# ----------------------------------------------------------------------------
def rgat_attn_kernel(feat_ref, el_t_ref, er_ref, bias_ref, adj_ref, *rest,
                     n_heads, head_dim, hd, apply_relu, fuse_linear):
    if fuse_linear:
        lin_wt_ref, lin_b_ref, out_ref, acc_ref = rest
    else:
        out_ref, acc_ref = rest

    e = pl.program_id(1)            # edge type (reduction, innermost, "arbitrary")

    @pl.when(e == 0)
    def _():
        acc_ref[...] = jnp.zeros_like(acc_ref)

    feat = feat_ref[...]            # (Ns_p, HD_p) f32, precomputed per etype
    el_t = el_t_ref[...]            # (Hp, Ns_p)   f32
    er = er_ref[...]                # (tile_nd, Hp) f32, dst nodes = first Nd src rows

    # Mask handling hoisted out of the head loop (one convert, one sub/mul).
    mask_f = adj_ref[...].astype(jnp.float32)        # (tile_nd, Ns_p), 0/1
    mask_bias = (mask_f - 1.0) * 1e30                # 0 where edge, -1e30 elsewhere

    D = head_dim
    outs = []
    for h in range(n_heads):                         # static unroll, H is small
        s = er[:, h:h + 1] + el_t[h:h + 1, :]        # (tile_nd, Ns_p)
        s = jnp.maximum(s, NEG_SLOPE * s)            # leaky_relu(., 0.2)
        s = s + mask_bias
        m = jnp.max(s, axis=1, keepdims=True)
        p = jnp.exp(s - m) * mask_f                  # mask_f keeps 0-in-degree rows at 0
        denom = jnp.sum(p, axis=1, keepdims=True)
        inv = pl.reciprocal(jnp.maximum(denom, 1e-30), approx=True)
        out_h = jnp.dot(p, feat[:, h * D:(h + 1) * D],
                        preferred_element_type=jnp.float32)          # (tile_nd, D)
        outs.append(out_h * inv)                     # normalise after the matmul
    pad_cols = acc_ref.shape[1] - hd
    if pad_cols:
        outs.append(jnp.zeros((acc_ref.shape[0], pad_cols), jnp.float32))
    acc_ref[...] += jnp.concatenate(outs, axis=1)    # single full-width accumulate

    @pl.when(e == pl.num_programs(1) - 1)
    def _():
        res = acc_ref[...] + bias_ref[...]           # bias pre-summed over etypes
        if apply_relu:
            res = jnp.maximum(res, 0.0)
        # TODO(synk): Dropout(0.5)/feat_drop/attn_drop are identity in eval mode.
        if fuse_linear:
            res = jnp.dot(res, lin_wt_ref[...],
                          preferred_element_type=jnp.float32) + lin_b_ref[...]
        out_ref[...] = res.astype(out_ref.dtype)


def rgat_attention(feat, el_t, er, bias_p, adj_p, lin=None, *,
                   n_heads, head_dim, hd, tile_nd, apply_relu):
    n_etypes, ns_p, hd_p = feat.shape
    hp = el_t.shape[1]
    nd_p = adj_p.shape[1]
    fuse_linear = lin is not None

    in_specs = [
        pl.BlockSpec((None, ns_p, hd_p), lambda i, e: (e, 0, 0)),    # feat_src[e]
        pl.BlockSpec((None, hp, ns_p), lambda i, e: (e, 0, 0)),      # el^T[e]
        pl.BlockSpec((None, tile_nd, hp), lambda i, e: (e, i, 0)),   # er[e] (dst rows)
        pl.BlockSpec((1, hd_p), lambda i, e: (0, 0)),                # summed bias
        pl.BlockSpec((None, tile_nd, ns_p), lambda i, e: (e, i, 0)), # int8 adjacency
    ]
    args = [feat, el_t, er, bias_p, adj_p]

    if fuse_linear:
        lin_wt_p, lin_b_p = lin
        c_p = lin_wt_p.shape[1]
        in_specs += [pl.BlockSpec((hd_p, c_p), lambda i, e: (0, 0)),
                     pl.BlockSpec((1, c_p), lambda i, e: (0, 0))]
        args += [lin_wt_p, lin_b_p]
        out_shape = jax.ShapeDtypeStruct((nd_p, c_p), jnp.float32)
        out_spec = pl.BlockSpec((tile_nd, c_p), lambda i, e: (i, 0))
    else:
        out_shape = jax.ShapeDtypeStruct((nd_p, hd_p), jnp.float32)
        out_spec = pl.BlockSpec((tile_nd, hd_p), lambda i, e: (i, 0))

    kernel = functools.partial(
        rgat_attn_kernel, n_heads=n_heads, head_dim=head_dim, hd=hd,
        apply_relu=apply_relu, fuse_linear=fuse_linear)

    return pl.pallas_call(
        kernel,
        out_shape=out_shape,
        grid_spec=pltpu.PrefetchScalarGridSpec(
            num_scalar_prefetch=0,
            grid=(nd_p // tile_nd, n_etypes),
            in_specs=in_specs,
            out_specs=out_spec,
            scratch_shapes=[pltpu.VMEM((tile_nd, hd_p), jnp.float32)],
        ),
        compiler_params=pltpu.CompilerParams(
            dimension_semantics=("parallel", "arbitrary")),
    )(*args)


# ----------------------------------------------------------------------------
# Full forward pass
# ----------------------------------------------------------------------------
def rgat_forward(params, blocks_adj, x, *, n_heads):
    """params['layers'][l]: dict(wt (E,Fin,H*D), attn_l (E,H,D), attn_r (E,H,D),
    bias (E,1,H*D)); params['lin_wt'] (H*D,C), params['lin_b'] (1,C).
    blocks_adj[l]: dense (E, Nd, Ns) adjacency masks (DGL block: dst = first Nd src)."""
    layers = params['layers']
    n_layers = len(layers)
    lin_wt, lin_b = params['lin_wt'], params['lin_b']
    n_classes = lin_wt.shape[1]

    # pad the input features once: rows and feature dim -> multiples of 128
    ns0, fin0 = x.shape
    h = _pad2(x, _round_up(ns0, LANE), _round_up(fin0, LANE)).astype(jnp.float32)

    nd = ns0
    for l, (lp, adj) in enumerate(zip(layers, blocks_adj)):
        n_etypes, nd, ns = adj.shape
        fin, hd = lp['wt'].shape[1], lp['wt'].shape[2]
        head_dim = hd // n_heads
        fin_p, hd_p = _round_up(fin, LANE), _round_up(hd, LANE)
        assert fin_p == h.shape[1] and ns <= h.shape[0]
        ns_p = h.shape[0]
        nd_p = _round_up(nd, LANE)
        tile_nd = LANE            # 128: safe VMEM footprint on v7x, megacore-friendly
        tile_ns = LANE
        hp = _round_up(n_heads, 8)

        # Fold attention vectors into the projection: wl/wr = W^T @ blockdiag(attn),
        # and pack [wl | wr] into one operand (single small matmul / DMA).
        wt4 = lp['wt'].reshape(n_etypes, fin, n_heads, head_dim)
        wl = jnp.einsum('efhd,ehd->efh', wt4, lp['attn_l'])
        wr = jnp.einsum('efhd,ehd->efh', wt4, lp['attn_r'])
        wlr = jnp.zeros((n_etypes, fin, 2 * hp), jnp.float32)
        wlr = wlr.at[:, :, :n_heads].set(wl)
        wlr = wlr.at[:, :, hp:hp + n_heads].set(wr)

        wt_p = _pad3(lp['wt'], fin_p, hd_p).astype(jnp.float32)
        wlr_p = _pad3(wlr, fin_p, 2 * hp).astype(jnp.float32)
        bias_p = _pad2(jnp.sum(lp['bias'], axis=0), 1, hd_p).astype(jnp.float32)
        adj_p = _pad3((adj > 0).astype(jnp.int8), nd_p, ns_p)

        # Hoisted per-etype projections (computed once, not once per dst tile).
        feat, el_t, er = rgat_projection(h, wt_p, wlr_p, hp=hp, tile_ns=tile_ns)

        is_last = (l == n_layers - 1)
        lin = None
        if is_last:
            c_p = _round_up(n_classes, LANE)
            lin = (_pad2(lin_wt, hd_p, c_p).astype(jnp.float32),
                   _pad2(lin_b, 1, c_p).astype(jnp.float32))

        h = rgat_attention(feat, el_t, er, bias_p, adj_p, lin,
                           n_heads=n_heads, head_dim=head_dim, hd=hd,
                           tile_nd=tile_nd, apply_relu=not is_last)

    return h[:nd, :n_classes]


# ----------------------------------------------------------------------------
# Pure-JAX reference (f32), mirroring the PyTorch/DGL semantics
# ----------------------------------------------------------------------------
def rgat_reference(params, blocks_adj, x, *, n_heads):
    h = x
    n_layers = len(params['layers'])
    for l, (lp, adj) in enumerate(zip(params['layers'], blocks_adj)):
        n_etypes, nd, ns = adj.shape
        hd = lp['wt'].shape[2]
        D = hd // n_heads
        acc = jnp.zeros((nd, hd), jnp.float32)
        for e in range(n_etypes):
            fs = (h @ lp['wt'][e]).reshape(ns, n_heads, D)
            el = jnp.einsum('nhd,hd->nh', fs, lp['attn_l'][e])
            er = jnp.einsum('nhd,hd->nh', fs[:nd], lp['attn_r'][e])
            s = er[:, None, :] + el[None, :, :]                # (nd, ns, H)
            s = jnp.where(s > 0, s, NEG_SLOPE * s)
            mask = (adj[e] > 0)[:, :, None]
            s = jnp.where(mask, s, -jnp.inf)
            alpha = jax.nn.softmax(s, axis=1)
            out_e = jnp.einsum('nmh,mhd->nhd', alpha, fs).reshape(nd, hd)
            acc = acc + out_e + lp['bias'][e]
        h = acc if l == n_layers - 1 else jnp.maximum(acc, 0.0)
    return h @ params['lin_wt'] + params['lin_b']


# ----------------------------------------------------------------------------
# Deterministic example
# ----------------------------------------------------------------------------
if __name__ == "__main__":
    key = jax.random.PRNGKey(0)
    keys = iter(jax.random.split(key, 64))

    etypes = ("cites", "writes")
    n_etypes = len(etypes)
    in_feats, n_hidden, n_classes = 32, 32, 8
    n_heads, num_hidden = 4, 2
    n_layers = num_hidden + 1
    head_dim = n_hidden // n_heads
    hd = n_heads * head_dim
    node_counts = [64, 32, 16, 8]          # N_src of layer l is node_counts[l]

    layer_params = []
    fin = in_feats
    for _ in range(n_layers):
        layer_params.append(dict(
            wt=0.1 * jax.random.normal(next(keys), (n_etypes, fin, hd), jnp.float32),
            attn_l=0.1 * jax.random.normal(next(keys), (n_etypes, n_heads, head_dim),
                                           jnp.float32),
            attn_r=0.1 * jax.random.normal(next(keys), (n_etypes, n_heads, head_dim),
                                           jnp.float32),
            bias=jnp.zeros((n_etypes, 1, hd), jnp.float32),   # DGL inits bias to 0
        ))
        fin = n_hidden

    params = dict(
        layers=layer_params,
        lin_wt=0.1 * jax.random.normal(next(keys), (n_hidden, n_classes), jnp.float32),
        lin_b=jnp.zeros((1, n_classes), jnp.float32),
    )

    # dense per-etype adjacency with self-loops (no zero-in-degree dst nodes)
    blocks_adj = []
    for l in range(n_layers):
        ns, nd = node_counts[l], node_counts[l + 1]
        a = (jax.random.uniform(next(keys), (n_etypes, nd, ns)) < 0.3).astype(jnp.float32)
        a = jnp.maximum(a, jnp.eye(nd, ns, dtype=jnp.float32)[None])
        blocks_adj.append(a)

    x = jax.random.normal(next(keys), (node_counts[0], in_feats), jnp.float32)

    out = rgat_forward(params, blocks_adj, x, n_heads=n_heads)
    out = jax.block_until_ready(out)
    assert out.shape == (node_counts[-1], n_classes), out.shape
    assert bool(jnp.all(jnp.isfinite(out)))

    ref = rgat_reference(params, blocks_adj, x, n_heads=n_heads)
    err = float(jnp.max(jnp.abs(out - ref)))
    assert err < 5e-2, f"max abs err vs reference: {err}"
    print("KERNEL_OK")
</pallas_src>

<mosaic_0001>
module attributes {stable_mosaic.version = 11 : i64} {
  func.func @rgat_proj_kernel(%arg0: i32, %arg1: i32, %arg2: memref<128x128xf32, #tpu.memory_space<vmem>>, %arg3: memref<1x128x128xf32, #tpu.memory_space<vmem>>, %arg4: memref<1x128x16xf32, #tpu.memory_space<vmem>>, %arg5: memref<1x128x128xf32, #tpu.memory_space<vmem>>, %arg6: memref<1x8x128xf32, #tpu.memory_space<vmem>>, %arg7: memref<1x128x8xf32, #tpu.memory_space<vmem>>) attributes {dimension_semantics = [#tpu.dimension_semantics<arbitrary>, #tpu.dimension_semantics<parallel>], iteration_bounds = array<i64: 2, 1>, scalar_prefetch = 0 : i64, scratch_operands = 0 : i64, tpu.core_type = #tpu.core_type<tc>, window_params = [{transform_indices = @transform_0, window_bounds = array<i64: 128, 128>}, {transform_indices = @transform_1, window_bounds = array<i64: 1, 128, 128>}, {transform_indices = @transform_2, window_bounds = array<i64: 1, 128, 16>}, {transform_indices = @transform_3, window_bounds = array<i64: 1, 128, 128>}, {transform_indices = @transform_4, window_bounds = array<i64: 1, 8, 128>}, {transform_indices = @transform_5, window_bounds = array<i64: 1, 128, 8>}]} {
    %c0 = arith.constant 0 : index
    %c0_0 = arith.constant 0 : index
    %0 = vector.load %arg2[%c0, %c0_0] : memref<128x128xf32, #tpu.memory_space<vmem>>, vector<128x128xf32>
    %c0_1 = arith.constant 0 : index
    %c0_2 = arith.constant 0 : index
    %c0_3 = arith.constant 0 : index
    %1 = vector.load %arg3[%c0_1, %c0_2, %c0_3] : memref<1x128x128xf32, #tpu.memory_space<vmem>>, vector<1x128x128xf32>
    %2 = vector.shape_cast %1 : vector<1x128x128xf32> to vector<128x128xf32>
    %cst = arith.constant dense<0.000000e+00> : vector<128x128xf32>
    %3 = tpu.matmul %0, %2, %cst {dimension_numbers = #tpu.dot_dimension_numbers<[1], [0], [0], [1], [0, 0, 1, 1], [], []>} : vector<128x128xf32>, vector<128x128xf32>, vector<128x128xf32> -> vector<128x128xf32>
    %c0_4 = arith.constant 0 : index
    %c0_5 = arith.constant 0 : index
    %c0_6 = arith.constant 0 : index
    %4 = vector.load %arg5[%c0_4, %c0_5, %c0_6] : memref<1x128x128xf32, #tpu.memory_space<vmem>>, vector<1x128x128xf32>
    %5 = vector.shape_cast %4 : vector<1x128x128xf32> to vector<128x128xf32>
    %6 = vector.shape_cast %3 : vector<128x128xf32> to vector<1x128x128xf32>
    tpu.vector_store %arg5[%c0_4, %c0_5, %c0_6], %6 {strides = array<i32>} : memref<1x128x128xf32, #tpu.memory_space<vmem>>, vector<1x128x128xf32>,
    %c0_7 = arith.constant 0 : index
    %c0_8 = arith.constant 0 : index
    %c0_9 = arith.constant 0 : index
    %7 = vector.load %arg4[%c0_7, %c0_8, %c0_9] : memref<1x128x16xf32, #tpu.memory_space<vmem>>, vector<1x128x16xf32>
    %8 = vector.shape_cast %7 : vector<1x128x16xf32> to vector<128x16xf32>
    %cst_10 = arith.constant dense<0.000000e+00> : vector<128x16xf32>
    %9 = tpu.matmul %0, %8, %cst_10 {dimension_numbers = #tpu.dot_dimension_numbers<[1], [0], [0], [1], [0, 0, 1, 1], [], []>} : vector<128x128xf32>, vector<128x16xf32>, vector<128x16xf32> -> vector<128x16xf32>
    %10 = vector.extract_strided_slice %9 {offsets = [0, 0], sizes = [128, 8], strides = [1, 1]} : vector<128x16xf32> to vector<128x8xf32>
    %11 = tpu.transpose %10, [1, 0] : vector<128x8xf32> -> vector<8x128xf32>
    %c0_11 = arith.constant 0 : index
    %c0_12 = arith.constant 0 : index
    %c0_13 = arith.constant 0 : index
    %12 = vector.load %arg6[%c0_11, %c0_12, %c0_13] : memref<1x8x128xf32, #tpu.memory_space<vmem>>, vector<1x8x128xf32>
    %13 = vector.shape_cast %12 : vector<1x8x128xf32> to vector<8x128xf32>
    %14 = vector.shape_cast %11 : vector<8x128xf32> to vector<1x8x128xf32>
    tpu.vector_store %arg6[%c0_11, %c0_12, %c0_13], %14 {strides = array<i32>} : memref<1x8x128xf32, #tpu.memory_space<vmem>>, vector<1x8x128xf32>,
    %15 = vector.extract_strided_slice %9 {offsets = [0, 8], sizes = [128, 8], strides = [1, 1]} : vector<128x16xf32> to vector<128x8xf32>
    %c0_14 = arith.constant 0 : index
    %c0_15 = arith.constant 0 : index
    %c0_16 = arith.constant 0 : index
    %16 = vector.load %arg7[%c0_14, %c0_15, %c0_16] : memref<1x128x8xf32, #tpu.memory_space<vmem>>, vector<1x128x8xf32>
    %17 = vector.shape_cast %16 : vector<1x128x8xf32> to vector<128x8xf32>
    %18 = vector.shape_cast %15 : vector<128x8xf32> to vector<1x128x8xf32>
    tpu.vector_store %arg7[%c0_14, %c0_15, %c0_16], %18 {strides = array<i32>} : memref<1x128x8xf32, #tpu.memory_space<vmem>>, vector<1x128x8xf32>,
    return
  }
  func.func @transform_0(%arg0: i32, %arg1: i32) -> (i32, i32) {
    %c0_i32 = arith.constant 0 : i32
    %c0_i32_0 = arith.constant 0 : i32
    return %arg1, %c0_i32 : i32, i32
  }
  func.func @transform_1(%arg0: i32, %arg1: i32) -> (i32, i32, i32) {
    %c0_i32 = arith.constant 0 : i32
    %c0_i32_0 = arith.constant 0 : i32
    %c0_i32_1 = arith.constant 0 : i32
    return %arg0, %c0_i32, %c0_i32_0 : i32, i32, i32
  }
  func.func @transform_2(%arg0: i32, %arg1: i32) -> (i32, i32, i32) {
    %c0_i32 = arith.constant 0 : i32
    %c0_i32_0 = arith.constant 0 : i32
    %c0_i32_1 = arith.constant 0 : i32
    return %arg0, %c0_i32, %c0_i32_0 : i32, i32, i32
  }
  func.func @transform_3(%arg0: i32, %arg1: i32) -> (i32, i32, i32) {
    %c0_i32 = arith.constant 0 : i32
    %c0_i32_0 = arith.constant 0 : i32
    return %arg0, %arg1, %c0_i32 : i32, i32, i32
  }
  func.func @transform_4(%arg0: i32, %arg1: i32) -> (i32, i32, i32) {
    %c0_i32 = arith.constant 0 : i32
    %c0_i32_0 = arith.constant 0 : i32
    return %arg0, %c0_i32, %arg1 : i32, i32, i32
  }
  func.func @transform_5(%arg0: i32, %arg1: i32) -> (i32, i32, i32) {
    %c0_i32 = arith.constant 0 : i32
    %c0_i32_0 = arith.constant 0 : i32
    return %arg0, %arg1, %c0_i32 : i32, i32, i32
  }
}

</mosaic_0001>

<bundles_post_ra>
// kernel: tpu_custom_call.1
= control target key start
LH: loop header
LB: loop body
LE: loop exit
PB: predicated region body
PF: predicated region fallthrough
CT: control target
= control target key end

     0   :  { %11 = vsyncpa [#allocation3], 0  ;;  %s1846_s0 = inlined_call_operand.hbm [shape: f32[128,128], index: 0, kind: input, shape index: {}]   ;;  %s1847_s1 = inlined_call_operand.vmem [shape: f32[2,128,128], index: 1, kind: input, shape index: {}]   ;;  %s1848_s2 = inlined_call_operand.vmem [shape: f32[2,128,16], index: 2, kind: input, shape index: {}]   ;;  %s1849_s3 = inlined_call_operand.hbm [shape: f32[2,128,128], index: 3, kind: output, shape index: {0}]   ;;  %s1850_s4 = inlined_call_operand.hbm [shape: f32[2,8,128], index: 4, kind: output, shape index: {1}]   ;;  %s1851_s5 = inlined_call_operand.vmem [shape: f32[2,128,8], index: 5, kind: output, shape index: {2}]  }
   0x1   :  { %12 = vsyncpa [#allocation4], 0 }
   0x2   :  { %14 = vsyncpa [#allocation4 + $0x1], 0 }
   0x3   :  { %15 = vsyncpa [#allocation7], 0 }
   0x4   :  { %17 = vsyncpa [#allocation7 + $0x1], 0  ;;  %s1527_s18 = smov 0   ;;  %s1529_s19 = smov 0  }
   0x5   :  { %s1531_s20 = smov 0   ;;  %s1533_s21 = smov 0  }
   0x6   :  { %s1535_s22 = smov 0   ;;  %s1537_s23 = smov 0  }
   0x7 LB: > { %s1003_s24 = sadd.s32 4294967295, %s1487_s23   ;;  %s1004_s25 = sadd.s32 4294967294, %s1487_s23   ;;  %s1487_s23 = sphi %s1537_s23, %s23_s23   ;;  %s1483_s22 = sphi %s1535_s22, %s1869_s22   ;;  %s1479_s21 = sphi %s1533_s21, %s1868_s21   ;;  %s1475_s20 = sphi %s1531_s20, %s1867_s20   ;;  %s1471_s19 = sphi %s1529_s19, %s1866_s19   ;;  %s1467_s18 = sphi %s1527_s18, %s1865_s18  }
   0x8   : > { %s35_s26 = sadd.s32 1, %s1483_s22  ;;  %s122_s27 = sadd.s32 1, %s1475_s20 }
   0x9   : > { %p37_p0 = scmp.ge.s32.totalorder %s35_s26, 2  ;;  %p132_p1 = scmp.ne.s32.totalorder %s1475_s20, %s1471_s19 }
   0xa   : > { %p133_p2 = scmp.eq.s32.totalorder %s1003_s24, 1  ;;  %p138_p3 = scmp.ne.s32.totalorder %s1471_s19, %s1467_s18 }
   0xb   : > { %s1871_s26 = smov (%p37_p0, %s35_s26), 0  ;;  %p139_p5 = scmp.eq.s32.totalorder %s1004_s25, 1 }
   0xc   : > { %p1567_p4 = por %p133_p2, %p132_p1  ;;  %s117_s29 = ssub.s32 %s1483_s22, %s1871_s26 }
   0xd   : > { %p1005_p6 = scmp.ge.s32.totalorder %s1487_s23, 1  ;;  %p120_p7 = scmp.eq.s32.totalorder %s117_s29, 0 }
   0xe   : > { %s1856_s28 = scalar_select %p1567_p4, 1, 0 }
   0xf   : > { %p1574_p8 = por %p139_p5, %p138_p3  ;;  %p202_p9 = scmp.lt.s32.totalorder %s1487_s23, 3 }
  0x10   : > { %s1580_s6 = scalar_select %p120_p7, %s1475_s20, %s122_s27  }
  0x11   : > { %s1857_s30 = scalar_select %p1574_p8, 1, 0 }
  0x12   : > { %p1582_p10 = pnand %p1005_p6, %p202_p9  ;;  %p1586_p11 = scmp.eq.s32.totalorder %s1003_s24, 0 }
  0x13   : > { %s1489_s9 = smov [#allocation2]   ;;  %s1345_s14 = scalar_lea.hbm %s1846_s0, 2048 }
  0x14   : > { %s1858_s7 = scalar_select %p1582_p10, 1, 0 }
  0x15   : > { %s1859_s8 = scalar_select %p1586_p11, 1, 0 }
  0x16   : > { %p1277_p12 = pneg %p1582_p10  ;;  %s217_s10 = sshll.u32 %s1489_s9, 4  ;;  %s218_s10 = int_to_ptr.vmem [resolvable:$true] %s217_s10 }
  0x17   : > { %p1346_p0 = scmp.ne.s32.totalorder %s1846_s0, %s1345_s14  ;;  %p1352_p5 = scmp.lt.u32.totalorder %s1345_s14, %s1846_s0 }
  0x18   : > { %p1594_p13 = pnand %p1586_p11, %p1277_p12 }
  0x1a   : > { %p1347_p1 = pneg %p1594_p13 }
  0x1c   : > { %p1348_p2 = pnand %p1347_p1, %p1346_p0 }
  0x1e   : > { %p1349_p3 = pneg %p1348_p2 }
  0x20   : > { %p1354_p6 = pnand %p1352_p5, %p1349_p3 }
  0x22   : > { %1357 = shalt.err (!%p1354_p6)
}
  0x23   : > { %s1358_s25 = scalar_lea.vmem %s218_s10, 2048  ;;  %p1366_p8 = scmp.lt.s32.totalorder %s218_s10, %s218_s10 }
  0x24   : > { %p1359_p7 = scmp.ne.s32.totalorder %s218_s10, %s1358_s25  ;;  %p1367_p4 = scmp.lt.s32.totalorder %s1358_s25, %s1358_s25 }
  0x26   : > { %p1361_p9 = pnand %p1359_p7, %p1347_p1  ;;  %p1368_p11 = por %p1367_p4, %p1366_p8 }
  0x28   : > { %p1362_p12 = pneg %p1361_p9 }
  0x2a   : > { %p1369_p10 = pnand %p1368_p11, %p1362_p12 }
  0x2c   : > { %1372 = shalt.err (!%p1369_p10)
}
  0x2d   : > { %s1490_s27 = smov 128   ;;  %s1491_s29 = smov 8  }
  0x2e   : > { %1280 = dma.hbm_to_vmem [thread:$0]  (!%p1594_p13), %s1846_s0, 2048, %s218_s10, [#allocation3], %s1490_s27, %s1490_s27, %s1491_s29  }
  0x2f   : > { %p1861_p0 = scmp.ne.s32.totalorder %s1858_s7, 0 }
  0x30   : > { %p1862_p2 = scmp.ne.s32.totalorder (!%p1861_p0), %s1859_s8, 0 }
  0x31   : > { %249 = sbr.rel (%p1861_p0) target bundleno = 504 (0x1f8), region = 32 }
  0x38   : > { %1454 = dma.done.wait (%p1862_p2), [#allocation3], 2048  }
  0x39   : > { %1456 = vsyncadd (%p1862_p2), [#allocation3], 4294965248  ;;  %p297_p4 = scmp.lt.s32.totalorder %s1479_s21, 1  ;;  %v318_v9 = vld [vmem:[#allocation2] sm:$0xff]  ;;  %v319_v45 = vld [vmem:[#allocation2 + $0x8] sm:$0xff]  ;;  %s1492_s17 = smov 120  }
  0x3a   : > { %1181 = vmatprep.mubr.f32.mxu1 %v318_v9  ;;  %1125 = vmatprep.mubr.f32.mxu0 %v318_v9  ;;  %v320_v47 = vld [vmem:[#allocation2 + $0x10] sm:$0xff]  ;;  %v321_v50 = vld [vmem:[#allocation2 + $0x18] sm:$0xff]  ;;  %v322_v52 = vld [vmem:[#allocation2 + $0x20] sm:$0xff]  ;;  %s1673_s24 = sand.u32 1, %s1471_s19   ;;  %s1028_s29 = sshll.u32 %s1479_s21, 11 }
  0x3b   : > { %s298_s13 = scalar_select %p297_p4, %s1479_s21, 1  ;;  %v323_v53 = vld [vmem:[#allocation2 + $0x28] sm:$0xff]  ;;  %v324_v54 = vld [vmem:[#allocation2 + $0x30] sm:$0xff]  ;;  %v325_v55 = vld [vmem:[#allocation2 + $0x38] sm:$0xff] }
  0x3c   : > { %v326_v56 = vld [vmem:[#allocation2 + $0x40] sm:$0xff]  ;;  %v327_v57 = vld [vmem:[#allocation2 + $0x48] sm:$0xff]  ;;  %v328_v58 = vld [vmem:[#allocation2 + $0x50] sm:$0xff]  ;;  %s1010_s25 = sshll.u32 %s1673_s24, 7  ;;  %s787_s15 = scalar_lea.sflag [#allocation4], %s1673_s24 }
  0x3d   : > { %s1622_s14 = sshll.u32 %s298_s13, 7  ;;  %v329_v59 = vld [vmem:[#allocation2 + $0x58] sm:$0xff]  ;;  %v330_v60 = vld [vmem:[#allocation2 + $0x60] sm:$0xff]  ;;  %v331_v61 = vld [vmem:[#allocation2 + $0x68] sm:$0xff]  ;;  %s1677_s27 = scalar_lea.vmem [#allocation5], %s1010_s25 }
  0x3e   : > { %s1628_s10 = scalar_lea.vmem %s1848_s2, %s1622_s14  ;;  %s1642_s16 = scalar_lea.vmem %s1847_s1, %s1622_s14  ;;  %v332_v62 = vld [vmem:[#allocation2 + $0x70] sm:$0xff]  ;;  %v333_v63 = vld [vmem:[#allocation2 + $0x78] sm:$0xff] }
  0x3f   : > { %v511_v0 = vld [vmem:[%s1628_s10] sm:$0xff]  ;;  %v512_v1 = vld [vmem:[%s1628_s10 + $0x8] sm:$0xff]  ;;  %v513_v2 = vld [vmem:[%s1628_s10 + $0x10] sm:$0xff]  ;;  %s1714_s13 = scalar_lea.hbm %s1849_s3, %s1028_s29  ;;  %s816_s11 = sshll.u32 %s1677_s27, 4  ;;  %s1719_s11 = int_to_ptr.vmem [resolvable:$true] %s816_s11 }
  0x40   : > { %v1237_v3 = vpack.c.bf16 %v512_v1, %v511_v0  ;;  %v514_v4 = vld [vmem:[%s1628_s10 + $0x18] sm:$0xff]  ;;  %v515_v6 = vld [vmem:[%s1628_s10 + $0x20] sm:$0xff]  ;;  %v516_v7 = vld [vmem:[%s1628_s10 + $0x28] sm:$0xff]  ;;  %p1863_p10 = scmp.ne.s32.totalorder %s1856_s28, 0  ;;  %s1493_s7 = smov [#allocation5]  }
  0x41   : > { %v1241_v5 = vpack.c.bf16 %v514_v4, %v513_v2  ;;  %v1245_v8 = vpack.c.bf16 %v516_v7, %v515_v6  ;;  %v517_v10 = vld [vmem:[%s1628_s10 + $0x30] sm:$0xff]  ;;  %v518_v11 = vld [vmem:[%s1628_s10 + $0x38] sm:$0xff]  ;;  %v519_v13 = vld [vmem:[%s1628_s10 + $0x40] sm:$0xff]  ;;  %s1377_s8 = sshll.u32 %s1493_s7, 4  ;;  %s1378_s8 = int_to_ptr.vmem [resolvable:$false] %s1377_s8 }
  0x42   : > { %1238 = vmatprep.subr.bf16.mxu1 %v1237_v3  ;;  %v1249_v12 = vpack.c.bf16 %v518_v11, %v517_v10  ;;  %v520_v14 = vld [vmem:[%s1628_s10 + $0x48] sm:$0xff]  ;;  %v334_v15 = vld [vmem:[%s1642_s16] sm:$0xff]  ;;  %v336_v17 = vld [vmem:[%s1642_s16 + $0x10] sm:$0xff]  ;;  %p1380_p1 = scmp.lt.s32.totalorder %s1719_s11, %s1378_s8 }
  0x43   : > { %1240 = vmatpush3.bf16.msra.mxu1 %v1237_v3  ;;  %v335_v16 = vld [vmem:[%s1642_s16 + $0x8] sm:$0xff]  ;;  %v337_v18 = vld [vmem:[%s1642_s16 + $0x18] sm:$0xff]  ;;  %v1253_v21 = vpack.c.bf16 %v520_v14, %v519_v13  ;;  %v338_v22 = vld [vmem:[%s1642_s16 + $0x20] sm:$0xff] }
  0x44   : > { %1242 = vmatprep.subr.bf16.mxu1 %v1241_v5  ;;  %v1205_v19 = vpack.c.bf16 %v335_v16, %v334_v15  ;;  %v1209_v20 = vpack.c.bf16 %v337_v18, %v336_v17  ;;  %v339_v23 = vld [vmem:[%s1642_s16 + $0x28] sm:$0xff]  ;;  %v521_v24 = vld [vmem:[%s1628_s10 + $0x50] sm:$0xff]  ;;  %v522_v25 = vld [vmem:[%s1628_s10 + $0x58] sm:$0xff] }
  0x45   : > { %v1213_v26 = vpack.c.bf16 %v339_v23, %v338_v22  ;;  %v1257_v27 = vpack.c.bf16 %v522_v25, %v521_v24  ;;  %v340_v28 = vld [vmem:[%s1642_s16 + $0x30] sm:$0xff]  ;;  %v341_v29 = vld [vmem:[%s1642_s16 + $0x38] sm:$0xff]  ;;  %v523_v30 = vld [vmem:[%s1628_s10 + $0x60] sm:$0xff] }
  0x46   : > { %1206 = vmatprep.subr.bf16.mxu0 %v1205_v19  ;;  %v524_v31 = vld [vmem:[%s1628_s10 + $0x68] sm:$0xff]  ;;  %v1217_v32 = vpack.c.bf16 %v341_v29, %v340_v28  ;;  %v342_v34 = vld [vmem:[%s1642_s16 + $0x40] sm:$0xff]  ;;  %v525_v36 = vld [vmem:[%s1628_s10 + $0x70] sm:$0xff] }
  0x47   : > { %1244 = vmatpush3.bf16.msra.mxu1 %v1241_v5  ;;  %1208 = vmatpush3.bf16.msra.mxu0 %v1205_v19  ;;  %v1261_v33 = vpack.c.bf16 %v524_v31, %v523_v30  ;;  %v343_v35 = vld [vmem:[%s1642_s16 + $0x48] sm:$0xff]  ;;  %v526_v37 = vld [vmem:[%s1628_s10 + $0x78] sm:$0xff]  ;;  %v344_v40 = vld [vmem:[%s1642_s16 + $0x50] sm:$0xff]  ;;  %s1373_s10 = scalar_lea.vmem %s1719_s11, 2048 }
  0x48   : > { %1246 = vmatprep.subr.bf16.mxu1 %v1245_v8  ;;  %1210 = vmatprep.subr.bf16.mxu0 %v1209_v20  ;;  %v1221_v38 = vpack.c.bf16 %v343_v35, %v342_v34  ;;  %v1265_v39 = vpack.c.bf16 %v526_v37, %v525_v36  ;;  %v345_v41 = vld [vmem:[%s1642_s16 + $0x58] sm:$0xff]  ;;  %v346_v43 = vld [vmem:[%s1642_s16 + $0x60] sm:$0xff]  ;;  %v347_v44 = vld [vmem:[%s1642_s16 + $0x68] sm:$0xff]  ;;  %p1374_p8 = scmp.ne.s32.totalorder %s1719_s11, %s1373_s10 }
  0x49   : > { %v1225_v42 = vpack.c.bf16 %v345_v41, %v344_v40  ;;  %v1229_v46 = vpack.c.bf16 %v347_v44, %v346_v43  ;;  %v348_v48 = vld [vmem:[%s1642_s16 + $0x70] sm:$0xff]  ;;  %v349_v49 = vld [vmem:[%s1642_s16 + $0x78] sm:$0xff]  ;;  %s1379_s16 = scalar_lea.vmem %s1378_s8, 4096 }
  0x4a   : > { %v1233_v51 = vpack.c.bf16 %v349_v49, %v348_v48  ;;  %p1375_p11 = pnand %p1374_p8, %p1863_p10  ;;  %p1381_p3 = scmp.lt.s32.totalorder %s1379_s16, %s1373_s10 }
  0x4b   : > { %1248 = vmatpush3.bf16.msra.mxu1 %v1245_v8  ;;  %1212 = vmatpush3.bf16.msra.mxu0 %v1209_v20 }
  0x4c   : > { %1250 = vmatprep.subr.bf16.mxu1 %v1249_v12  ;;  %1214 = vmatprep.subr.bf16.mxu0 %v1213_v26  ;;  %p1376_p13 = pneg %p1375_p11  ;;  %p1382_p5 = por %p1381_p3, %p1380_p1 }
  0x4e   : > { %p1383_p6 = pnand %p1382_p5, %p1376_p13 }
  0x4f   : > { %1252 = vmatpush3.bf16.msra.mxu1 %v1249_v12  ;;  %1216 = vmatpush3.bf16.msra.mxu0 %v1213_v26 }
  0x50   : > { %1254 = vmatprep.subr.bf16.mxu1 %v1253_v21  ;;  %1218 = vmatprep.subr.bf16.mxu0 %v1217_v32 }
  0x53   : > { %1256 = vmatpush3.bf16.msra.mxu1 %v1253_v21  ;;  %1220 = vmatpush3.bf16.msra.mxu0 %v1217_v32 }
  0x54   : > { %1258 = vmatprep.subr.bf16.mxu1 %v1257_v27  ;;  %1222 = vmatprep.subr.bf16.mxu0 %v1221_v38 }
  0x57   : > { %1260 = vmatpush3.bf16.msra.mxu1 %v1257_v27  ;;  %1224 = vmatpush3.bf16.msra.mxu0 %v1221_v38 }
  0x58   : > { %1262 = vmatprep.subr.bf16.mxu1 %v1261_v33  ;;  %1226 = vmatprep.subr.bf16.mxu0 %v1225_v42 }
  0x5b   : > { %1264 = vmatpush3.bf16.msra.mxu1 %v1261_v33  ;;  %1228 = vmatpush3.bf16.msra.mxu0 %v1225_v42 }
  0x5c   : > { %1266 = vmatprep.subr.bf16.mxu1 %v1265_v39  ;;  %1230 = vmatprep.subr.bf16.mxu0 %v1229_v46 }
  0x5f   : > { %1268 = vmatpush3.bf16.msra.mxu1 %v1265_v39  ;;  %1232 = vmatpush3.bf16.msra.mxu0 %v1229_v46 }
  0x60   : > { %1234 = vmatprep.subr.bf16.mxu0 %v1233_v51 }
  0x62   : > { %1182 = vmatmul.mubr.f32.vlgmr.msra.gmra.mrb[0].mxu1 %v319_v45 }
  0x63   : > { %1184 = vmatprep.mubr.f32.mxu1 %v320_v47  ;;  %1236 = vmatpush3.bf16.msra.mxu0 %v1233_v51 }
  0x66   : > { %1185 = vmatmul.mubr.f32.gmra.mrb[2].mxu1 %v321_v50  ;;  %1126 = vmatmul.mubr.f32.vlgmr.msra.gmra.mrb[0].mxu0 %v319_v45 }
  0x67   : > { %1187 = vmatprep.mubr.f32.mxu1 %v322_v52  ;;  %1128 = vmatprep.mubr.f32.mxu0 %v320_v47 }
  0x6a   : > { %1188 = vmatmul.mubr.f32.gmra.mrb[4].mxu1 %v323_v53  ;;  %1129 = vmatmul.mubr.f32.gmra.mrb[2].mxu0 %v321_v50 }
  0x6b   : > { %1190 = vmatprep.mubr.f32.mxu1 %v324_v54  ;;  %1131 = vmatprep.mubr.f32.mxu0 %v322_v52 }
  0x6e   : > { %1191 = vmatmul.mubr.f32.gmra.mrb[6].mxu1 %v325_v55  ;;  %1132 = vmatmul.mubr.f32.gmra.mrb[4].mxu0 %v323_v53 }
  0x6f   : > { %1193 = vmatprep.mubr.f32.mxu1 %v326_v56  ;;  %1134 = vmatprep.mubr.f32.mxu0 %v324_v54 }
  0x72   : > { %1194 = vmatmul.mubr.f32.gmra.mrb[8].mxu1 %v327_v57  ;;  %1135 = vmatmul.mubr.f32.gmra.mrb[6].mxu0 %v325_v55 }
  0x73   : > { %1196 = vmatprep.mubr.f32.mxu1 %v328_v58  ;;  %1137 = vmatprep.mubr.f32.mxu0 %v326_v56 }
  0x76   : > { %1197 = vmatmul.mubr.f32.gmra.mrb[10].mxu1 %v329_v59  ;;  %1138 = vmatmul.mubr.f32.gmra.mrb[8].mxu0 %v327_v57 }
  0x77   : > { %1199 = vmatprep.mubr.f32.mxu1 %v330_v60  ;;  %1140 = vmatprep.mubr.f32.mxu0 %v328_v58 }
  0x7a   : > { %1200 = vmatmul.mubr.f32.gmra.mrb[12].mxu1 %v331_v61  ;;  %1141 = vmatmul.mubr.f32.gmra.mrb[10].mxu0 %v329_v59 }
  0x7b   : > { %1202 = vmatprep.mubr.f32.mxu1 %v332_v62  ;;  %1143 = vmatprep.mubr.f32.mxu0 %v330_v60 }
  0x7e   : > { %1203 = vmatmul.mubr.f32.gmra.mrb[14].mxu1 %v333_v63  ;;  %1144 = vmatmul.mubr.f32.gmra.mrb[12].mxu0 %v331_v61 }
  0x7f   : > { %1146 = vmatprep.mubr.f32.mxu0 %v332_v62 }
  0x82   : > { %1147 = vmatmul.mubr.f32.gmra.mrb[14].mxu0 %v333_v63 }
 0x135   : > { %v1183_v0 = vpop.f32.mrb[0].mxu1 }
 0x136   : > { %723 = vrot.lane.b32.xlu1 %v1183_v0, %s1492_s17  ;;  %v593_v1 = vpop.f32.mrb[1].mxu1 }
 0x137   : > { %672 = vxpose.xlu0.b32.start [1/16] (narrow) %v593_v1, 8 }
 0x139   : > { %v1186_v2 = vpop.f32.mrb[2].mxu1  ;;  %v1127_v9 = vpop.f32.mrb[0].mxu0 }
 0x13a   : > { %721 = vrot.lane.b32.xlu1 %v593_v1, %s1492_s17  ;;  %v603_v3 = vpop.f32.mrb[3].mxu1  ;;  %v416_v11 = vpop.f32.mrb[1].mxu0  ;;  %496 = vst [vmem:[%s1677_s27 + $0x8] sm:$0xff] %v1127_v9 }
 0x13b   : > { %673 = vxpose.xlu0.b32.cont [2/16] (narrow) %v1183_v0, 8  ;;  %495 = vst [vmem:[%s1677_s27] sm:$0xff] %v416_v11 }
 0x13d   : > { %v1189_v4 = vpop.f32.mrb[4].mxu1  ;;  %v1130_v13 = vpop.f32.mrb[2].mxu0 }
 0x13e   : > { %727 = vrot.lane.b32.xlu1 %v1186_v2, %s1492_s17  ;;  %v613_v5 = vpop.f32.mrb[5].mxu1  ;;  %498 = vst [vmem:[%s1677_s27 + $0x18] sm:$0xff] %v1130_v13  ;;  %v426_v15 = vpop.f32.mrb[3].mxu0 }
 0x13f   : > { %674 = vxpose.xlu0.b32.cont [3/16] (narrow) %v603_v3, 8  ;;  %497 = vst [vmem:[%s1677_s27 + $0x10] sm:$0xff] %v426_v15 }
 0x141   : > { %v1192_v6 = vpop.f32.mrb[6].mxu1  ;;  %v1133_v17 = vpop.f32.mrb[4].mxu0 }
 0x142   : > { %725 = vrot.lane.b32.xlu1 %v603_v3, %s1492_s17  ;;  %v623_v7 = vpop.f32.mrb[7].mxu1  ;;  %500 = vst [vmem:[%s1677_s27 + $0x28] sm:$0xff] %v1133_v17  ;;  %v436_v19 = vpop.f32.mrb[5].mxu0 }
 0x143   : > { %675 = vxpose.xlu0.b32.cont [4/16] (narrow) %v1186_v2, 8  ;;  %499 = vst [vmem:[%s1677_s27 + $0x20] sm:$0xff] %v436_v19 }
 0x145   : > { %v1195_v8 = vpop.f32.mrb[8].mxu1  ;;  %v1136_v21 = vpop.f32.mrb[6].mxu0 }
 0x146   : > { %731 = vrot.lane.b32.xlu1 %v1189_v4, %s1492_s17  ;;  %v633_v10 = vpop.f32.mrb[9].mxu1  ;;  %502 = vst [vmem:[%s1677_s27 + $0x38] sm:$0xff] %v1136_v21  ;;  %v446_v23 = vpop.f32.mrb[7].mxu0 }
 0x147   : > { %676 = vxpose.xlu0.b32.cont [5/16] (narrow) %v613_v5, 8  ;;  %501 = vst [vmem:[%s1677_s27 + $0x30] sm:$0xff] %v446_v23 }
 0x149   : > { %v1198_v12 = vpop.f32.mrb[10].mxu1  ;;  %v1139_v24 = vpop.f32.mrb[8].mxu0 }
 0x14a   : > { %729 = vrot.lane.b32.xlu1 %v613_v5, %s1492_s17  ;;  %v643_v14 = vpop.f32.mrb[11].mxu1  ;;  %504 = vst [vmem:[%s1677_s27 + $0x48] sm:$0xff] %v1139_v24  ;;  %v456_v25 = vpop.f32.mrb[9].mxu0 }
 0x14b   : > { %677 = vxpose.xlu0.b32.cont [6/16] (narrow) %v1189_v4, 8  ;;  %503 = vst [vmem:[%s1677_s27 + $0x40] sm:$0xff] %v456_v25 }
 0x14d   : > { %v1684_v16 = vpop.f32.mrb[12].mxu1  ;;  %v1142_v26 = vpop.f32.mrb[10].mxu0 }
 0x14e   : > { %735 = vrot.lane.b32.xlu1 %v1192_v6, %s1492_s17  ;;  %v1687_v18 = vpop.f32.mrb[13].mxu1  ;;  %506 = vst [vmem:[%s1677_s27 + $0x58] sm:$0xff] %v1142_v26  ;;  %v466_v27 = vpop.f32.mrb[11].mxu0 }
 0x14f   : > { %678 = vxpose.xlu0.b32.cont [7/16] (narrow) %v623_v7, 8  ;;  %505 = vst [vmem:[%s1677_s27 + $0x50] sm:$0xff] %v466_v27 }
 0x151   : > { %v1691_v20 = vpop.f32.mrb[14].mxu1  ;;  %v1145_v28 = vpop.f32.mrb[12].mxu0 }
 0x152   : > { %733 = vrot.lane.b32.xlu1 %v623_v7, %s1492_s17  ;;  %v1694_v22 = vpop.f32.mrb[15].mxu1  ;;  %508 = vst [vmem:[%s1677_s27 + $0x68] sm:$0xff] %v1145_v28  ;;  %v476_v29 = vpop.f32.mrb[13].mxu0 }
 0x153   : > { %679 = vxpose.xlu0.b32.cont [8/16] (narrow) %v1192_v6, 8  ;;  %507 = vst [vmem:[%s1677_s27 + $0x60] sm:$0xff] %v476_v29 }
 0x155   : > { %v1148_v30 = vpop.f32.mrb[14].mxu0 }
 0x156   : > { %739 = vrot.lane.b32.xlu1 %v1195_v8, %s1492_s17  ;;  %510 = vst [vmem:[%s1677_s27 + $0x78] sm:$0xff] %v1148_v30  ;;  %v486_v31 = vpop.f32.mrb[15].mxu0 }
 0x157   : > { %680 = vxpose.xlu0.b32.cont [9/16] (narrow) %v633_v10, 8  ;;  %509 = vst [vmem:[%s1677_s27 + $0x70] sm:$0xff] %v486_v31 }
 0x15a   : > { %737 = vrot.lane.b32.xlu1 %v633_v10, %s1492_s17 }
 0x15b   : > { %681 = vxpose.xlu0.b32.cont [10/16] (narrow) %v1195_v8, 8 }
 0x15e   : > { %743 = vrot.lane.b32.xlu1 %v1198_v12, %s1492_s17 }
 0x15f   : > { %682 = vxpose.xlu0.b32.cont [11/16] (narrow) %v643_v14, 8 }
 0x162   : > { %741 = vrot.lane.b32.xlu1 %v643_v14, %s1492_s17 }
 0x163   : > { %683 = vxpose.xlu0.b32.cont [12/16] (narrow) %v1198_v12, 8 }
 0x166   : > { %747 = vrot.lane.b32.xlu1 %v1684_v16, %s1492_s17 }
 0x167   : > { %684 = vxpose.xlu0.b32.cont [13/16] (narrow) %v1687_v18, 8 }
 0x168   : > { %1386 = shalt.err (!%p1383_p6)
}
 0x169   : > { %s1387_s25 = scalar_lea.hbm %s1714_s13, 2048  ;;  %s1391_s9 = scalar_lea.hbm %s1849_s3, 4096 }
 0x16a   : > { %p1388_p7 = scmp.ne.s32.totalorder %s1714_s13, %s1387_s25  ;;  %p1392_p0 = scmp.lt.u32.totalorder %s1714_s13, %s1849_s3 }
 0x16b   : > { %p1393_p2 = scmp.lt.u32.totalorder %s1391_s9, %s1387_s25  ;;  %p1395_p8 = scmp.lt.u32.totalorder %s1387_s25, %s1714_s13 }
 0x16c   : > { %p1389_p9 = pnand %p1388_p7, %p1863_p10 }
 0x16d   : > { %p1394_p4 = por %p1393_p2, %p1392_p0 }
 0x16e   : > { %p1390_p12 = pneg %p1389_p9 }
 0x16f   : > { %p1396_p11 = por %p1395_p8, %p1394_p4 }
 0x171   : > { %p1397_p13 = pnand %p1396_p11, %p1390_p12 }
 0x173   : > { %1400 = shalt.err (!%p1397_p13)
}
 0x174   : > { %s1494_s10 = smov 128   ;;  %s1495_s8 = smov 8   ;;  %745 = vrot.lane.b32.xlu1 %v1687_v18, %s1492_s17  ;;  %685 = vxpose.xlu0.b32.cont [14/16] (narrow) %v1684_v16, 8  ;;  %vm769_vm0 = vcmask 64512  }
 0x175   : > { %1273 = dma.vmem_to_hbm [thread:$0]  (%p1863_p10), %s1719_s11, 2048, %s1714_s13, %s787_s15, %s1494_s10, %s1494_s10, %s1495_s8  }
 0x176   : > { %s1759_s13 = scalar_lea.vmem %s1851_s5, %s1622_s14  ;;  %s1011_s11 = sshll.u32 %s1673_s24, 3 }
 0x177   : > { %s284_s14 = scalar_lea.vmem [#allocation6], %s1011_s11  ;;  %s1022_s15 = sshll.u32 %s1479_s21, 7 }
 0x178   : > { %749 = vrot.lane.b32.xlu1 %v1694_v22, %s1492_s17  ;;  %686 = vxpose.xlu0.b32.cont [15/16] (narrow) %v1694_v22, 8  ;;  %s1776_s9 = scalar_lea.hbm %s1850_s4, %s1022_s15  ;;  %s792_s12 = scalar_lea.sflag [#allocation7], %s1673_s24 }
 0x179   : > { %s1496_s7 = smov [#allocation6]  }
 0x17a   : > { %s1405_s10 = sshll.u32 %s1496_s7, 4  ;;  %s1406_s10 = int_to_ptr.vmem [resolvable:$false] %s1405_s10 }
 0x17b   : > { %s1407_s8 = scalar_lea.vmem %s1406_s10, 256 }
 0x17c   : > { %751 = vrot.lane.b32.xlu1 %v1691_v20, %s1492_s17  ;;  %687 = vxpose.xlu0.b32.end [16/16] (narrow) %v1691_v20, 8  ;;  %s833_s17 = sshll.u32 %s284_s14, 4  ;;  %s1771_s17 = int_to_ptr.vmem [resolvable:$true] %s833_s17 }
 0x17d   : > { %s1401_s21 = scalar_lea.vmem %s1771_s17, 128  ;;  %p1408_p6 = scmp.lt.s32.totalorder %s1771_s17, %s1406_s10 }
 0x17e   : > { %p1402_p1 = scmp.ne.s32.totalorder %s1771_s17, %s1401_s21  ;;  %p1409_p7 = scmp.lt.s32.totalorder %s1407_s8, %s1401_s21 }
 0x180   : > { %p1403_p3 = pnand %p1402_p1, %p1863_p10  ;;  %p1410_p9 = por %p1409_p7, %p1408_p6 }
 0x182   : > { %p1404_p5 = pneg %p1403_p3 }
 0x184   : > { %p1411_p12 = pnand %p1410_p9, %p1404_p5 }
 0x1a8   : > { %v724_v32 = vpop.permute.xlu1 %723 }
 0x1a9   : > { %771 = vst.msk [vmem:[%s1759_s13 + $0x8] sm:$0xff] %vm769_vm0, %v724_v32 }
 0x1ac   : > { %v722_v33 = vpop.permute.xlu1 %721 }
 0x1ad   : > { %770 = vst.msk [vmem:[%s1759_s13] sm:$0xff] %vm769_vm0, %v722_v33 }
 0x1b0   : > { %v728_v34 = vpop.permute.xlu1 %727 }
 0x1b1   : > { %773 = vst.msk [vmem:[%s1759_s13 + $0x18] sm:$0xff] %vm769_vm0, %v728_v34 }
 0x1b4   : > { %v726_v35 = vpop.permute.xlu1 %725 }
 0x1b5   : > { %772 = vst.msk [vmem:[%s1759_s13 + $0x10] sm:$0xff] %vm769_vm0, %v726_v35 }
 0x1b8   : > { %v732_v37 = vpop.permute.xlu1 %731 }
 0x1b9   : > { %775 = vst.msk [vmem:[%s1759_s13 + $0x28] sm:$0xff] %vm769_vm0, %v732_v37 }
 0x1c0   : > { %v688_v36 = vpop.trf.xlu0 }
 0x1c1   : > { %704 = vst [vmem:[%s284_s14] sm:$0xff] %v688_v36 }
 0x1c2   : > { %1414 = shalt.err (!%p1411_p12)
}
 0x1c3   : > { %s1415_s24 = scalar_lea.hbm %s1776_s9, 128  ;;  %s1419_s11 = scalar_lea.hbm %s1850_s4, 256 }
 0x1c4   : > { %p1416_p0 = scmp.ne.s32.totalorder %s1776_s9, %s1415_s24  ;;  %p1420_p8 = scmp.lt.u32.totalorder %s1776_s9, %s1850_s4 }
 0x1c5   : > { %p1421_p11 = scmp.lt.u32.totalorder %s1419_s11, %s1415_s24  ;;  %p1423_p1 = scmp.lt.u32.totalorder %s1415_s24, %s1776_s9 }
 0x1c6   : > { %p1417_p2 = pnand %p1416_p0, %p1863_p10 }
 0x1c7   : > { %p1422_p13 = por %p1421_p11, %p1420_p8 }
 0x1c8   : > { %p1418_p4 = pneg %p1417_p2 }
 0x1c9   : > { %p1424_p3 = por %p1423_p1, %p1422_p13 }
 0x1cb   : > { %p1425_p5 = pnand %p1424_p3, %p1418_p4 }
 0x1cd   : > { %1428 = shalt.err (!%p1425_p5)
}
 0x1ce   : > { %1274 = dma.vmem_to_hbm [thread:$0]  (%p1863_p10), %s1771_s17, 128, %s1776_s9, %s792_s12   ;;  %v730_v38 = vpop.permute.xlu1 %729 }
 0x1cf   : > { %774 = vst.msk [vmem:[%s1759_s13 + $0x20] sm:$0xff] %vm769_vm0, %v730_v38 }
 0x1d2   : > { %v736_v39 = vpop.permute.xlu1 %735 }
 0x1d3   : > { %777 = vst.msk [vmem:[%s1759_s13 + $0x38] sm:$0xff] %vm769_vm0, %v736_v39 }
 0x1d6   : > { %v734_v40 = vpop.permute.xlu1 %733 }
 0x1d7   : > { %776 = vst.msk [vmem:[%s1759_s13 + $0x30] sm:$0xff] %vm769_vm0, %v734_v40 }
 0x1da   : > { %v740_v41 = vpop.permute.xlu1 %739 }
 0x1db   : > { %779 = vst.msk [vmem:[%s1759_s13 + $0x48] sm:$0xff] %vm769_vm0, %v740_v41 }
 0x1de   : > { %v738_v42 = vpop.permute.xlu1 %737 }
 0x1df   : > { %778 = vst.msk [vmem:[%s1759_s13 + $0x40] sm:$0xff] %vm769_vm0, %v738_v42 }
 0x1e2   : > { %v744_v43 = vpop.permute.xlu1 %743 }
 0x1e3   : > { %781 = vst.msk [vmem:[%s1759_s13 + $0x58] sm:$0xff] %vm769_vm0, %v744_v43 }
 0x1e6   : > { %v742_v44 = vpop.permute.xlu1 %741 }
 0x1e7   : > { %780 = vst.msk [vmem:[%s1759_s13 + $0x50] sm:$0xff] %vm769_vm0, %v742_v44 }
 0x1ea   : > { %v748_v45 = vpop.permute.xlu1 %747 }
 0x1eb   : > { %783 = vst.msk [vmem:[%s1759_s13 + $0x68] sm:$0xff] %vm769_vm0, %v748_v45 }
 0x1ee   : > { %v746_v46 = vpop.permute.xlu1 %745 }
 0x1ef   : > { %782 = vst.msk [vmem:[%s1759_s13 + $0x60] sm:$0xff] %vm769_vm0, %v746_v46 }
 0x1f2   : > { %v750_v47 = vpop.permute.xlu1 %749 }
 0x1f3   : > { %784 = vst.msk [vmem:[%s1759_s13 + $0x70] sm:$0xff] %vm769_vm0, %v750_v47 }
 0x1f6   : > { %v752_v48 = vpop.permute.xlu1 %751 }
 0x1f7   : > { %785 = vst.msk [vmem:[%s1759_s13 + $0x78] sm:$0xff] %vm769_vm0, %v752_v48 }
 0x1f8 PF: > { %p1290_p10 = scmp.ge.s32.totalorder %s1487_s23, 2  ;;  %s849_s28 = sand.u32 1, %s1467_s18  }
 0x1f9   : > { %p1864_p6 = scmp.ne.s32.totalorder %s1857_s30, 0  ;;  %s850_s17 = scalar_lea.sflag [#allocation4], %s849_s28 }
 0x1fb   : > { %p1282_p7 = pnand %p1290_p10, %p1864_p6 }
 0x1fd   : > { %1458 = dma.done.wait (!%p1282_p7), %s850_s17, 2048  }
 0x1fe   : > { %1460 = vsyncadd (!%p1282_p7), %s850_s17, 4294965248  ;;  %s859_s27 = scalar_lea.sflag [#allocation7], %s849_s28 }
 0x1ff   : > { %1462 = dma.done.wait (!%p1282_p7), %s859_s27, 128  }
 0x200   : > { %1464 = vsyncadd (!%p1282_p7), %s859_s27, 4294967168  ;;  %s23_s23 = sadd.s32 1, %s1487_s23   ;;  %s1865_s18 = smov %s1471_s19 }
 0x201   : > { %p20_p9 = scmp.ge.s32.totalorder %s23_s23, 4   ;;  %s1866_s19 = smov %s1475_s20 }
 0x202   : > { %s1867_s20 = smov %s1580_s6  ;;  %s1868_s21 = smov %s1483_s22 }
 0x203   : > { %s1869_s22 = smov %s1871_s26  ;;  %22 = sbr.rel (!%p20_p9) target bundleno = 7 (0x7), region = 105 }
 0x20a   :  { %876 = vsyncpa [#allocation3], 1 }
 0x20b   :  { %878 = vsyncpa [#allocation3 + $0x1], 1 }
 0x20c   :  { %879 = vsyncpa [#allocation4], 1 }
 0x20d   :  { %881 = vsyncpa [#allocation4 + $0x1], 1 }
 0x20e   :  { %882 = vsyncpa [#allocation7], 1 }
 0x20f   :  { %884 = vsyncpa [#allocation7 + $0x1], 1 }

</bundles_post_ra>
